<compile_context>
chip_gen: v6e
topology: v6e:2x2x1
jax: 0.10.0
libtpu: 0.0.40
codegen_flags: <defaults>
</compile_context>

<pallas_src>
import functools

import jax
import jax.numpy as jnp
from jax.experimental import pallas as pl
from jax.experimental.pallas import tpu as pltpu

CIN = 3
KH = KW = 3


def _round_up(x, m):
    return (x + m - 1) // m * m


def edge_kernel(w_ref, b_ref, x_ref, o_ref, *, H, W, HWp):
    # w_ref: SMEM (27,)  flattened (cin, kh, kw) conv weights (f32)
    # b_ref: SMEM (1,)   bias (f32)
    # x_ref: VMEM (NB, CIN*HWp)  channels folded into the lane dim
    # o_ref: VMEM (NB, HWp)      dense output slab
    NB = x_ref.shape[0]

    # (row, col) of every flattened spatial lane (cheap setup, once per step).
    idx = jax.lax.broadcasted_iota(jnp.int32, (1, HWp), 1)
    if (W & (W - 1)) == 0:                      # W is a power of two
        row = idx >> (W.bit_length() - 1)
        col = idx & (W - 1)
    else:
        row = idx // W
        col = idx - row * W

    # Validity per kernel offset, reproducing the zero padding (p=1).
    row_ok = [row >= 1, None, row <= H - 2]     # dh = -1, 0, +1 (None = all ok)
    col_ok = [col >= 1, None, col <= W - 2]     # dw = -1, 0, +1

    # Per-channel rows; HWp is a multiple of 128 so these are aligned lane
    # slices (no relayout).
    xs = [x_ref[:, c * HWp:(c + 1) * HWp].astype(jnp.float32) for c in range(CIN)]

    acc = jnp.full((NB, HWp), b_ref[0], dtype=jnp.float32)
    for kh in range(KH):
        dh = kh - 1
        for kw in range(KW):
            dw = kw - 1
            # Combine channels first (roll is linear), scalar-splat weights.
            y = xs[0] * w_ref[kh * KW + kw]
            for c in range(1, CIN):
                y = y + xs[c] * w_ref[c * (KH * KW) + kh * KW + kw]
            # shifted[i] = y[i + dh*W + dw]  (wrapped lanes get masked below)
            shift = (-(dh * W + dw)) % HWp
            if shift:
                y = pltpu.roll(y, shift, axis=1)
            # Border mask for this tap (where, not *0, so inf/NaN can't leak).
            if row_ok[kh] is not None and col_ok[kw] is not None:
                m = jnp.logical_and(row_ok[kh], col_ok[kw])
            elif row_ok[kh] is not None:
                m = row_ok[kh]
            else:
                m = col_ok[kw]                  # may be None for the center tap
            if m is not None:
                y = jnp.where(m, y, 0.0)
            acc = acc + y
    o_ref[:, :] = jax.nn.sigmoid(acc).astype(o_ref.dtype)


def _pick_batch_block(n, lane_width, elem_bytes, budget):
    """Largest batch block NB (divisor of n, multiple of 8 or == n) whose
    sublane-padded input block fits `budget` bytes. No >=2-step forcing."""
    cands = [d for d in range(1, n + 1)
             if n % d == 0 and (d % 8 == 0 or d == n)]
    fits = [d for d in cands
            if _round_up(d, 8) * lane_width * elem_bytes <= budget]
    if fits:
        return max(fits)
    return min(cands)   # nothing fits the budget cleanly; smallest legal block


def edge_detector(x, weight, bias):
    """x: (N, 3, H, W), weight: (1, 3, 3, 3), bias: (1,). Returns (N, 1, H, W)."""
    N, C, H, W = x.shape
    assert C == CIN
    HW = H * W
    HWp = _round_up(HW, 128)       # keep the output store lane-dense

    x3 = x.reshape(N, CIN, HW)
    if HWp != HW:
        # Padded lanes are never read by an unmasked tap and are sliced off.
        x3 = jnp.pad(x3, ((0, 0), (0, 0), (0, HWp - HW)))
    x_flat = x3.reshape(N, CIN * HWp)                     # channels -> lanes
    w_flat = weight.reshape(-1).astype(jnp.float32)       # (27,), (cin,kh,kw)
    b_flat = bias.reshape(-1).astype(jnp.float32)

    try:
        vmem_cap = pltpu.get_tpu_info().vmem_capacity_bytes
    except Exception:
        vmem_cap = 64 << 20                               # v7x worst case
    in_budget = min(8 << 20, vmem_cap // 8)               # per input block

    NB = _pick_batch_block(N, CIN * HWp, x.dtype.itemsize, in_budget)
    nb_pad = _round_up(NB, 8)
    in_block = nb_pad * CIN * HWp * x.dtype.itemsize
    out_block = nb_pad * HWp * x.dtype.itemsize
    temps = 8 * nb_pad * HWp * 4                          # acc/xs/roll temps (f32)
    vmem_limit = 2 * (in_block + out_block) + temps + (4 << 20)
    vmem_limit = max(32 << 20, min(vmem_limit, vmem_cap - (4 << 20)))

    # TODO(synk): for very large images (or tiny N on v7x's 2 TensorCores),
    # additionally tile over H with a 1-row halo so the grid has >=2 parallel
    # steps and blocks fit the 64 MiB VMEM.
    out = pl.pallas_call(
        functools.partial(edge_kernel, H=H, W=W, HWp=HWp),
        out_shape=jax.ShapeDtypeStruct((N, HWp), x.dtype),
        grid_spec=pltpu.PrefetchScalarGridSpec(
            num_scalar_prefetch=0,
            grid=(N // NB,),
            in_specs=[
                pl.BlockSpec(memory_space=pltpu.MemorySpace.SMEM),  # weights
                pl.BlockSpec(memory_space=pltpu.MemorySpace.SMEM),  # bias
                pl.BlockSpec((NB, CIN * HWp), lambda n: (n, 0)),
            ],
            out_specs=pl.BlockSpec((NB, HWp), lambda n: (n, 0)),
        ),
        compiler_params=pltpu.CompilerParams(
            dimension_semantics=("parallel",),
            vmem_limit_bytes=int(vmem_limit)),
    )(w_flat, b_flat, x_flat)

    if HWp != HW:
        out = out[:, :HW]
    return out.reshape(N, 1, H, W)


if __name__ == "__main__":
    key = jax.random.PRNGKey(0)
    kx, kw, kb = jax.random.split(key, 3)

    N, H, W = 2, 16, 16
    x = jax.random.normal(kx, (N, CIN, H, W), dtype=jnp.float32)

    # Deterministic Conv2d(3, 1, 3) parameters (PyTorch-style uniform init).
    fan_in = CIN * KH * KW
    bound = 1.0 / (fan_in ** 0.5)
    weight = jax.random.uniform(kw, (1, CIN, KH, KW), jnp.float32, -bound, bound)
    bias = jax.random.uniform(kb, (1,), jnp.float32, -bound, bound)

    out = edge_detector(x, weight, bias)
    out = jax.block_until_ready(out)

    # Reference check against XLA conv.
    ref = jax.nn.sigmoid(
        jax.lax.conv_general_dilated(
            x, weight, window_strides=(1, 1), padding="SAME",
            dimension_numbers=("NCHW", "OIHW", "NCHW"),
        ) + bias.reshape(1, 1, 1, 1)
    )
    assert out.shape == (N, 1, H, W)
    assert jnp.allclose(out, ref, atol=1e-5, rtol=1e-5)

    print("KERNEL_OK")
</pallas_src>

<mosaic_0001>
module attributes {stable_mosaic.version = 11 : i64} {
  func.func @edge_kernel(%arg0: i32, %arg1: memref<27xf32, #tpu.memory_space<smem>>, %arg2: memref<1xf32, #tpu.memory_space<smem>>, %arg3: memref<2x768xf32, #tpu.memory_space<vmem>>, %arg4: memref<2x256xf32, #tpu.memory_space<vmem>>) attributes {dimension_semantics = [#tpu.dimension_semantics<parallel>], iteration_bounds = array<i64: 1>, scalar_prefetch = 0 : i64, scratch_operands = 0 : i64, tpu.core_type = #tpu.core_type<tc>, window_params = [{transform_indices = @transform_0, window_bounds = array<i64: 27>}, {transform_indices = @transform_1, window_bounds = array<i64: 1>}, {transform_indices = @transform_2, window_bounds = array<i64: 2, 768>}, {transform_indices = @transform_3, window_bounds = array<i64: 2, 256>}]} {
    %0 = tpu.iota {dimensions = array<i32: 1>} : vector<1x256xi32>
    %c4_i32 = arith.constant 4 : i32
    %1 = vector.broadcast %c4_i32 : i32 to vector<1x256xi32>
    %2 = arith.shrsi %0, %1 : vector<1x256xi32>
    %c15_i32 = arith.constant 15 : i32
    %3 = vector.broadcast %c15_i32 : i32 to vector<1x256xi32>
    %4 = arith.andi %0, %3 : vector<1x256xi32>
    %c1_i32 = arith.constant 1 : i32
    %5 = vector.broadcast %c1_i32 : i32 to vector<1x256xi32>
    %6 = arith.cmpi sge, %2, %5 : vector<1x256xi32>
    %c14_i32 = arith.constant 14 : i32
    %7 = vector.broadcast %c14_i32 : i32 to vector<1x256xi32>
    %8 = arith.cmpi sle, %2, %7 : vector<1x256xi32>
    %c1_i32_0 = arith.constant 1 : i32
    %9 = vector.broadcast %c1_i32_0 : i32 to vector<1x256xi32>
    %10 = arith.cmpi sge, %4, %9 : vector<1x256xi32>
    %c14_i32_1 = arith.constant 14 : i32
    %11 = vector.broadcast %c14_i32_1 : i32 to vector<1x256xi32>
    %12 = arith.cmpi sle, %4, %11 : vector<1x256xi32>
    %c0 = arith.constant 0 : index
    %c0_2 = arith.constant 0 : index
    %13 = vector.load %arg3[%c0, %c0_2] : memref<2x768xf32, #tpu.memory_space<vmem>>, vector<2x256xf32>
    %c0_3 = arith.constant 0 : index
    %c256 = arith.constant 256 : index
    %14 = vector.load %arg3[%c0_3, %c256] : memref<2x768xf32, #tpu.memory_space<vmem>>, vector<2x256xf32>
    %c0_4 = arith.constant 0 : index
    %c512 = arith.constant 512 : index
    %15 = vector.load %arg3[%c0_4, %c512] : memref<2x768xf32, #tpu.memory_space<vmem>>, vector<2x256xf32>
    %c0_5 = arith.constant 0 : index
    %16 = memref.load %arg2[%c0_5] : memref<1xf32, #tpu.memory_space<smem>>
    %17 = vector.broadcast %16 : f32 to vector<2x256xf32>
    %c0_6 = arith.constant 0 : index
    %18 = memref.load %arg1[%c0_6] : memref<27xf32, #tpu.memory_space<smem>>
    %19 = vector.broadcast %18 : f32 to vector<2x256xf32>
    %20 = arith.mulf %13, %19 : vector<2x256xf32>
    %c9 = arith.constant 9 : index
    %21 = memref.load %arg1[%c9] : memref<27xf32, #tpu.memory_space<smem>>
    %22 = vector.broadcast %21 : f32 to vector<2x256xf32>
    %23 = arith.mulf %14, %22 : vector<2x256xf32>
    %24 = arith.addf %20, %23 : vector<2x256xf32>
    %c18 = arith.constant 18 : index
    %25 = memref.load %arg1[%c18] : memref<27xf32, #tpu.memory_space<smem>>
    %26 = vector.broadcast %25 : f32 to vector<2x256xf32>
    %27 = arith.mulf %15, %26 : vector<2x256xf32>
    %28 = arith.addf %24, %27 : vector<2x256xf32>
    %c17_i32 = arith.constant 17 : i32
    %29 = tpu.dynamic_rotate %28 by %c17_i32 dim 1 : vector<2x256xf32>, i32 -> vector<2x256xf32>
    %30 = arith.andi %6, %10 : vector<1x256xi1>
    %cst = arith.constant 0.000000e+00 : f32
    %31 = vector.shape_cast %30 : vector<1x256xi1> to vector<1x256xi1>
    %32 = vector.broadcast %31 : vector<1x256xi1> to vector<2x256xi1>
    %33 = vector.broadcast %cst : f32 to vector<2x256xf32>
    %34 = arith.select %32, %29, %33 : vector<2x256xi1>, vector<2x256xf32>
    %35 = arith.addf %17, %34 : vector<2x256xf32>
    %c1 = arith.constant 1 : index
    %36 = memref.load %arg1[%c1] : memref<27xf32, #tpu.memory_space<smem>>
    %37 = vector.broadcast %36 : f32 to vector<2x256xf32>
    %38 = arith.mulf %13, %37 : vector<2x256xf32>
    %c10 = arith.constant 10 : index
    %39 = memref.load %arg1[%c10] : memref<27xf32, #tpu.memory_space<smem>>
    %40 = vector.broadcast %39 : f32 to vector<2x256xf32>
    %41 = arith.mulf %14, %40 : vector<2x256xf32>
    %42 = arith.addf %38, %41 : vector<2x256xf32>
    %c19 = arith.constant 19 : index
    %43 = memref.load %arg1[%c19] : memref<27xf32, #tpu.memory_space<smem>>
    %44 = vector.broadcast %43 : f32 to vector<2x256xf32>
    %45 = arith.mulf %15, %44 : vector<2x256xf32>
    %46 = arith.addf %42, %45 : vector<2x256xf32>
    %c16_i32 = arith.constant 16 : i32
    %47 = tpu.dynamic_rotate %46 by %c16_i32 dim 1 : vector<2x256xf32>, i32 -> vector<2x256xf32>
    %cst_7 = arith.constant 0.000000e+00 : f32
    %48 = vector.shape_cast %6 : vector<1x256xi1> to vector<1x256xi1>
    %49 = vector.broadcast %48 : vector<1x256xi1> to vector<2x256xi1>
    %50 = vector.broadcast %cst_7 : f32 to vector<2x256xf32>
    %51 = arith.select %49, %47, %50 : vector<2x256xi1>, vector<2x256xf32>
    %52 = arith.addf %35, %51 : vector<2x256xf32>
    %c2 = arith.constant 2 : index
    %53 = memref.load %arg1[%c2] : memref<27xf32, #tpu.memory_space<smem>>
    %54 = vector.broadcast %53 : f32 to vector<2x256xf32>
    %55 = arith.mulf %13, %54 : vector<2x256xf32>
    %c11 = arith.constant 11 : index
    %56 = memref.load %arg1[%c11] : memref<27xf32, #tpu.memory_space<smem>>
    %57 = vector.broadcast %56 : f32 to vector<2x256xf32>
    %58 = arith.mulf %14, %57 : vector<2x256xf32>
    %59 = arith.addf %55, %58 : vector<2x256xf32>
    %c20 = arith.constant 20 : index
    %60 = memref.load %arg1[%c20] : memref<27xf32, #tpu.memory_space<smem>>
    %61 = vector.broadcast %60 : f32 to vector<2x256xf32>
    %62 = arith.mulf %15, %61 : vector<2x256xf32>
    %63 = arith.addf %59, %62 : vector<2x256xf32>
    %c15_i32_8 = arith.constant 15 : i32
    %64 = tpu.dynamic_rotate %63 by %c15_i32_8 dim 1 : vector<2x256xf32>, i32 -> vector<2x256xf32>
    %65 = arith.andi %6, %12 : vector<1x256xi1>
    %cst_9 = arith.constant 0.000000e+00 : f32
    %66 = vector.shape_cast %65 : vector<1x256xi1> to vector<1x256xi1>
    %67 = vector.broadcast %66 : vector<1x256xi1> to vector<2x256xi1>
    %68 = vector.broadcast %cst_9 : f32 to vector<2x256xf32>
    %69 = arith.select %67, %64, %68 : vector<2x256xi1>, vector<2x256xf32>
    %70 = arith.addf %52, %69 : vector<2x256xf32>
    %c3 = arith.constant 3 : index
    %71 = memref.load %arg1[%c3] : memref<27xf32, #tpu.memory_space<smem>>
    %72 = vector.broadcast %71 : f32 to vector<2x256xf32>
    %73 = arith.mulf %13, %72 : vector<2x256xf32>
    %c12 = arith.constant 12 : index
    %74 = memref.load %arg1[%c12] : memref<27xf32, #tpu.memory_space<smem>>
    %75 = vector.broadcast %74 : f32 to vector<2x256xf32>
    %76 = arith.mulf %14, %75 : vector<2x256xf32>
    %77 = arith.addf %73, %76 : vector<2x256xf32>
    %c21 = arith.constant 21 : index
    %78 = memref.load %arg1[%c21] : memref<27xf32, #tpu.memory_space<smem>>
    %79 = vector.broadcast %78 : f32 to vector<2x256xf32>
    %80 = arith.mulf %15, %79 : vector<2x256xf32>
    %81 = arith.addf %77, %80 : vector<2x256xf32>
    %c1_i32_10 = arith.constant 1 : i32
    %82 = tpu.dynamic_rotate %81 by %c1_i32_10 dim 1 : vector<2x256xf32>, i32 -> vector<2x256xf32>
    %cst_11 = arith.constant 0.000000e+00 : f32
    %83 = vector.shape_cast %10 : vector<1x256xi1> to vector<1x256xi1>
    %84 = vector.broadcast %83 : vector<1x256xi1> to vector<2x256xi1>
    %85 = vector.broadcast %cst_11 : f32 to vector<2x256xf32>
    %86 = arith.select %84, %82, %85 : vector<2x256xi1>, vector<2x256xf32>
    %87 = arith.addf %70, %86 : vector<2x256xf32>
    %c4 = arith.constant 4 : index
    %88 = memref.load %arg1[%c4] : memref<27xf32, #tpu.memory_space<smem>>
    %89 = vector.broadcast %88 : f32 to vector<2x256xf32>
    %90 = arith.mulf %13, %89 : vector<2x256xf32>
    %c13 = arith.constant 13 : index
    %91 = memref.load %arg1[%c13] : memref<27xf32, #tpu.memory_space<smem>>
    %92 = vector.broadcast %91 : f32 to vector<2x256xf32>
    %93 = arith.mulf %14, %92 : vector<2x256xf32>
    %94 = arith.addf %90, %93 : vector<2x256xf32>
    %c22 = arith.constant 22 : index
    %95 = memref.load %arg1[%c22] : memref<27xf32, #tpu.memory_space<smem>>
    %96 = vector.broadcast %95 : f32 to vector<2x256xf32>
    %97 = arith.mulf %15, %96 : vector<2x256xf32>
    %98 = arith.addf %94, %97 : vector<2x256xf32>
    %99 = arith.addf %87, %98 : vector<2x256xf32>
    %c5 = arith.constant 5 : index
    %100 = memref.load %arg1[%c5] : memref<27xf32, #tpu.memory_space<smem>>
    %101 = vector.broadcast %100 : f32 to vector<2x256xf32>
    %102 = arith.mulf %13, %101 : vector<2x256xf32>
    %c14 = arith.constant 14 : index
    %103 = memref.load %arg1[%c14] : memref<27xf32, #tpu.memory_space<smem>>
    %104 = vector.broadcast %103 : f32 to vector<2x256xf32>
    %105 = arith.mulf %14, %104 : vector<2x256xf32>
    %106 = arith.addf %102, %105 : vector<2x256xf32>
    %c23 = arith.constant 23 : index
    %107 = memref.load %arg1[%c23] : memref<27xf32, #tpu.memory_space<smem>>
    %108 = vector.broadcast %107 : f32 to vector<2x256xf32>
    %109 = arith.mulf %15, %108 : vector<2x256xf32>
    %110 = arith.addf %106, %109 : vector<2x256xf32>
    %c255_i32 = arith.constant 255 : i32
    %111 = tpu.dynamic_rotate %110 by %c255_i32 dim 1 : vector<2x256xf32>, i32 -> vector<2x256xf32>
    %cst_12 = arith.constant 0.000000e+00 : f32
    %112 = vector.shape_cast %12 : vector<1x256xi1> to vector<1x256xi1>
    %113 = vector.broadcast %112 : vector<1x256xi1> to vector<2x256xi1>
    %114 = vector.broadcast %cst_12 : f32 to vector<2x256xf32>
    %115 = arith.select %113, %111, %114 : vector<2x256xi1>, vector<2x256xf32>
    %116 = arith.addf %99, %115 : vector<2x256xf32>
    %c6 = arith.constant 6 : index
    %117 = memref.load %arg1[%c6] : memref<27xf32, #tpu.memory_space<smem>>
    %118 = vector.broadcast %117 : f32 to vector<2x256xf32>
    %119 = arith.mulf %13, %118 : vector<2x256xf32>
    %c15 = arith.constant 15 : index
    %120 = memref.load %arg1[%c15] : memref<27xf32, #tpu.memory_space<smem>>
    %121 = vector.broadcast %120 : f32 to vector<2x256xf32>
    %122 = arith.mulf %14, %121 : vector<2x256xf32>
    %123 = arith.addf %119, %122 : vector<2x256xf32>
    %c24 = arith.constant 24 : index
    %124 = memref.load %arg1[%c24] : memref<27xf32, #tpu.memory_space<smem>>
    %125 = vector.broadcast %124 : f32 to vector<2x256xf32>
    %126 = arith.mulf %15, %125 : vector<2x256xf32>
    %127 = arith.addf %123, %126 : vector<2x256xf32>
    %c241_i32 = arith.constant 241 : i32
    %128 = tpu.dynamic_rotate %127 by %c241_i32 dim 1 : vector<2x256xf32>, i32 -> vector<2x256xf32>
    %129 = arith.andi %8, %10 : vector<1x256xi1>
    %cst_13 = arith.constant 0.000000e+00 : f32
    %130 = vector.shape_cast %129 : vector<1x256xi1> to vector<1x256xi1>
    %131 = vector.broadcast %130 : vector<1x256xi1> to vector<2x256xi1>
    %132 = vector.broadcast %cst_13 : f32 to vector<2x256xf32>
    %133 = arith.select %131, %128, %132 : vector<2x256xi1>, vector<2x256xf32>
    %134 = arith.addf %116, %133 : vector<2x256xf32>
    %c7 = arith.constant 7 : index
    %135 = memref.load %arg1[%c7] : memref<27xf32, #tpu.memory_space<smem>>
    %136 = vector.broadcast %135 : f32 to vector<2x256xf32>
    %137 = arith.mulf %13, %136 : vector<2x256xf32>
    %c16 = arith.constant 16 : index
    %138 = memref.load %arg1[%c16] : memref<27xf32, #tpu.memory_space<smem>>
    %139 = vector.broadcast %138 : f32 to vector<2x256xf32>
    %140 = arith.mulf %14, %139 : vector<2x256xf32>
    %141 = arith.addf %137, %140 : vector<2x256xf32>
    %c25 = arith.constant 25 : index
    %142 = memref.load %arg1[%c25] : memref<27xf32, #tpu.memory_space<smem>>
    %143 = vector.broadcast %142 : f32 to vector<2x256xf32>
    %144 = arith.mulf %15, %143 : vector<2x256xf32>
    %145 = arith.addf %141, %144 : vector<2x256xf32>
    %c240_i32 = arith.constant 240 : i32
    %146 = tpu.dynamic_rotate %145 by %c240_i32 dim 1 : vector<2x256xf32>, i32 -> vector<2x256xf32>
    %cst_14 = arith.constant 0.000000e+00 : f32
    %147 = vector.shape_cast %8 : vector<1x256xi1> to vector<1x256xi1>
    %148 = vector.broadcast %147 : vector<1x256xi1> to vector<2x256xi1>
    %149 = vector.broadcast %cst_14 : f32 to vector<2x256xf32>
    %150 = arith.select %148, %146, %149 : vector<2x256xi1>, vector<2x256xf32>
    %151 = arith.addf %134, %150 : vector<2x256xf32>
    %c8 = arith.constant 8 : index
    %152 = memref.load %arg1[%c8] : memref<27xf32, #tpu.memory_space<smem>>
    %153 = vector.broadcast %152 : f32 to vector<2x256xf32>
    %154 = arith.mulf %13, %153 : vector<2x256xf32>
    %c17 = arith.constant 17 : index
    %155 = memref.load %arg1[%c17] : memref<27xf32, #tpu.memory_space<smem>>
    %156 = vector.broadcast %155 : f32 to vector<2x256xf32>
    %157 = arith.mulf %14, %156 : vector<2x256xf32>
    %158 = arith.addf %154, %157 : vector<2x256xf32>
    %c26 = arith.constant 26 : index
    %159 = memref.load %arg1[%c26] : memref<27xf32, #tpu.memory_space<smem>>
    %160 = vector.broadcast %159 : f32 to vector<2x256xf32>
    %161 = arith.mulf %15, %160 : vector<2x256xf32>
    %162 = arith.addf %158, %161 : vector<2x256xf32>
    %c239_i32 = arith.constant 239 : i32
    %163 = tpu.dynamic_rotate %162 by %c239_i32 dim 1 : vector<2x256xf32>, i32 -> vector<2x256xf32>
    %164 = arith.andi %8, %12 : vector<1x256xi1>
    %cst_15 = arith.constant 0.000000e+00 : f32
    %165 = vector.shape_cast %164 : vector<1x256xi1> to vector<1x256xi1>
    %166 = vector.broadcast %165 : vector<1x256xi1> to vector<2x256xi1>
    %167 = vector.broadcast %cst_15 : f32 to vector<2x256xf32>
    %168 = arith.select %166, %163, %167 : vector<2x256xi1>, vector<2x256xf32>
    %169 = arith.addf %151, %168 : vector<2x256xf32>
    %170 = arith.negf %169 : vector<2x256xf32>
    %171 = math.exp %170 : vector<2x256xf32>
    %cst_16 = arith.constant 1.000000e+00 : f32
    %172 = vector.broadcast %cst_16 : f32 to vector<2x256xf32>
    %173 = arith.addf %172, %171 : vector<2x256xf32>
    %174 = arith.divf %172, %173 : vector<2x256xf32>
    %c0_17 = arith.constant 0 : index
    %c0_18 = arith.constant 0 : index
    %175 = vector.load %arg4[%c0_17, %c0_18] : memref<2x256xf32, #tpu.memory_space<vmem>>, vector<2x256xf32>
    tpu.vector_store %arg4[%c0_17, %c0_18], %174 {strides = array<i32>} : memref<2x256xf32, #tpu.memory_space<vmem>>, vector<2x256xf32>,
    return
  }
  func.func @transform_0(%arg0: i32) -> i32 {
    %c0_i32 = arith.constant 0 : i32
    %c0_i32_0 = arith.constant 0 : i32
    return %c0_i32 : i32
  }
  func.func @transform_1(%arg0: i32) -> i32 {
    %c0_i32 = arith.constant 0 : i32
    %c0_i32_0 = arith.constant 0 : i32
    return %c0_i32 : i32
  }
  func.func @transform_2(%arg0: i32) -> (i32, i32) {
    %c0_i32 = arith.constant 0 : i32
    %c0_i32_0 = arith.constant 0 : i32
    return %arg0, %c0_i32 : i32, i32
  }
  func.func @transform_3(%arg0: i32) -> (i32, i32) {
    %c0_i32 = arith.constant 0 : i32
    %c0_i32_0 = arith.constant 0 : i32
    return %arg0, %c0_i32 : i32, i32
  }
}

</mosaic_0001>

<bundles_post_ra>
// kernel: tpu_custom_call.1
= control target key start
LH: loop header
LB: loop body
LE: loop exit
PB: predicated region body
PF: predicated region fallthrough
CT: control target
= control target key end

     0   :  { %9 = vsyncpa [#allocation6], 0  ;;  %s769_s0 = inlined_call_operand.vmem [shape: f32[27], index: 0, kind: input, shape index: {}]   ;;  %s770_s1 = inlined_call_operand.<no memory space> [shape: f32[1], index: 1, kind: input, shape index: {}]   ;;  %s771_s2 = inlined_call_operand.hbm [shape: f32[2,768], index: 2, kind: input, shape index: {}]   ;;  %s772_s3 = inlined_call_operand.hbm [shape: f32[2,256], index: 3, kind: output, shape index: {}]  }
   0x1   :  { %10 = vsyncpa [#allocation4], 0 }
   0x2   :  { %11 = vsyncpa [#allocation5], 0  ;;  %s18_s14 = sshll.u32 %s769_s0, 4  ;;  %s19_s14 = int_to_ptr.vmem [resolvable:$true] %s18_s14 }
   0x3   :  { %s478_s15 = scalar_lea.vmem %s19_s14, 16  ;;  %p483_p1 = scmp.lt.s32.totalorder %s19_s14, %s19_s14 }
   0x4   :  { %p479_p0 = scmp.ne.s32.totalorder %s19_s14, %s478_s15  ;;  %p484_p2 = scmp.lt.s32.totalorder %s478_s15, %s478_s15 }
   0x6   :  { %p485_p3 = por %p484_p2, %p483_p1 }
   0x8   :  { %p486_p4 = pnand %p485_p3, %p479_p0 }
   0xa   :  { %489 = shalt.err (!%p486_p4)
}
   0xb   :  { %s536_s16 = smov [#allocation3]   ;;  %s537_s17 = smov [#allocation7]  }
   0xc   :  { %21 = dma.vmem_to_smem %s19_s14, 16, %s536_s16, [#allocation6]  }
   0xd   :  { %s30_s18 = sshll.u32 %s537_s17, 4  ;;  %s31_s18 = int_to_ptr.vmem [resolvable:$true] %s30_s18 }
   0xe   :  { %s498_s19 = scalar_lea.vmem %s31_s18, 192  ;;  %p503_p6 = scmp.lt.s32.totalorder %s31_s18, %s31_s18 }
   0xf   :  { %p499_p5 = scmp.ne.s32.totalorder %s31_s18, %s498_s19  ;;  %p504_p7 = scmp.lt.s32.totalorder %s498_s19, %s498_s19 }
  0x11   :  { %p505_p8 = por %p504_p7, %p503_p6 }
  0x13   :  { %p506_p9 = pnand %p505_p8, %p499_p5 }
  0x15   :  { %509 = shalt.err (!%p506_p9)
}
  0x16   :  { %33 = dma.hbm_to_vmem [thread:$0]  %s771_s2, 192, %s31_s18, [#allocation4]  }
  0x17   :  { %530 = dma.done.wait [#allocation6], 16  }
  0x18   :  { %531 = vsyncadd [#allocation6], 4294967280 }
  0x19   :  { %532 = dma.done.wait [#allocation4], 192  }
  0x1a   :  { %533 = vsyncadd [#allocation4], 4294967104 }
  0x1b   :  { %40 = sfence }
  0x1c   :  { %s431_s21 = sld [smem:[#allocation3 + $0x1]]  ;;  %v41_v0 = vlaneseq  ;;  %v538_v1 = vmov 1983009808   ;;  %v574_v3 = vld [vmem:[#allocation7] sm:$0xf]  ;;  %s539_s9 = smov 16  }
  0x1d   :  { %s432_s22 = sld [smem:[#allocation3 + $0xa]]  ;;  %v74_v2 = vunpack.c.l.s4 %v538_v1  ;;  %v576_v4 = vld [vmem:[#allocation7 + $0x4] sm:$0xf]  ;;  %v578_v5 = vld [vmem:[#allocation7 + $0x8] sm:$0xf]  ;;  %s540_s13 = smov 17  }
  0x1e   :  { %s433_s23 = sld [smem:[#allocation3 + $0x13]]  ;;  %v77_v7 = vshrl.u32 %v41_v0, 7  ;;  %s541_s18 = smov 15  }
  0x1f   :  { %s61_s24 = sld [smem:[#allocation3]]  ;;  %v75_v6 = vunpack.c.0.s8 %v74_v2 }
  0x20   :  { %s429_s25 = sld [smem:[#allocation3 + $0x9]] }
  0x21   :  { %s430_s26 = sld [smem:[#allocation3 + $0x12]]  ;;  %v584_v15 = vsub.s32 %v75_v6, %v77_v7 }
  0x22   :  { %v101_v8 = vstv %s431_s21  ;;  %s434_s2 = sld [smem:[#allocation3 + $0x2]] }
  0x23   :  { %v102_v9 = vmul.f32 %v101_v8, %v574_v3  ;;  %v104_v10 = vstv %s432_s22  ;;  %s435_s27 = sld [smem:[#allocation3 + $0xb]]  ;;  %s542_s22 = smov 1  }
  0x24   :  { %v105_v11 = vmul.f32 %v104_v10, %v576_v4  ;;  %v108_v12 = vstv %s433_s23  ;;  %s436_s28 = sld [smem:[#allocation3 + $0x14]]  ;;  %s543_s23 = smov 127  }
  0x25   :  { %v109_v13 = vmul.f32 %v108_v12, %v578_v5  ;;  %v62_v14 = vstv %s61_s24  ;;  %s437_s29 = sld [smem:[#allocation3 + $0x3]]  ;;  %s544_s24 = smov 113  }
  0x26   :  { %v106_v16 = vadd.f32 %v105_v11, %v102_v9  ;;  %v63_v17 = vmul.f32 %v62_v14, %v574_v3  ;;  %v65_v18 = vstv %s429_s25  ;;  %s438_s30 = sld [smem:[#allocation3 + $0xc]]  ;;  %s545_s25 = smov 112  }
  0x27   :  { %v66_v19 = vmul.f32 %v65_v18, %v576_v4  ;;  %v69_v20 = vstv %s430_s26  ;;  %s439_s4 = sld [smem:[#allocation3 + $0x15]]  ;;  %s546_s26 = smov 111  }
  0x28   :  { %v110_v21 = vadd.f32 %v109_v13, %v106_v16  ;;  %v70_v22 = vmul.f32 %v69_v20, %v578_v5  ;;  %v138_v23 = vstv %s434_s2  ;;  %s589_s5 = sld [smem:[#allocation3 + $0x5]] }
  0x29   :  { %v67_v24 = vadd.f32 %v66_v19, %v63_v17  ;;  %v139_v25 = vmul.f32 %v138_v23, %v574_v3  ;;  %v141_v26 = vstv %s435_s27  ;;  %s592_s6 = sld [smem:[#allocation3 + $0xe]] }
  0x2a   :  { %v118_v27 = vrot.slane %v110_v21, %v584_v15  ;;  %v142_v28 = vmul.f32 %v141_v26, %v576_v4  ;;  %v145_v29 = vstv %s436_s28  ;;  %s596_s7 = sld [smem:[#allocation3 + $0x17]] }
  0x2b   :  { %v71_v30 = vadd.f32 %v70_v22, %v67_v24  ;;  %v146_v31 = vmul.f32 %v145_v29, %v578_v5  ;;  %v177_v32 = vstv %s437_s29  ;;  %s599_s8 = sld [smem:[#allocation3 + $0x6]] }
  0x2c   :  { %122 = vrot.lane.b32.xlu1 %v118_v27, %s539_s9  ;;  %v119_v33 = vcombine.high %v118_v27, %v118_v27  ;;  %v143_v34 = vadd.f32 %v142_v28, %v139_v25  ;;  %v178_v35 = vmul.f32 %v177_v32, %v574_v3  ;;  %v180_v36 = vstv %s438_s30  ;;  %s602_s10 = sld [smem:[#allocation3 + $0xf]] }
  0x2d   :  { %v605_v37 = vrot.slane %v71_v30, %v584_v15  ;;  %v181_v38 = vmul.f32 %v180_v36, %v576_v4  ;;  %v184_v39 = vstv %s439_s4  ;;  %s608_s11 = sld [smem:[#allocation3 + $0x18]] }
  0x2e   :  { %v147_v40 = vadd.f32 %v146_v31, %v143_v34  ;;  %v185_v41 = vmul.f32 %v184_v39, %v578_v5  ;;  %v238_v42 = vstv %s589_s5  ;;  %s612_s12 = sld [smem:[#allocation3 + $0x7]] }
  0x2f   :  { %83 = vrot.lane.b32.xlu0 %v605_v37, %s540_s13  ;;  %v182_v43 = vadd.f32 %v181_v38, %v178_v35  ;;  %v239_v44 = vmul.f32 %v238_v42, %v574_v3  ;;  %v241_v45 = vstv %s592_s6  ;;  %s618_s14 = sld [smem:[#allocation3 + $0x10]]  ;;  %v80_v9 = vcombine.high %v605_v37, %v605_v37 }
  0x30   :  { %124 = vrot.lane.b32.xlu1 %v119_v33, %s539_s9  ;;  %v155_v46 = vrot.slane %v147_v40, %v584_v15  ;;  %v242_v47 = vmul.f32 %v241_v45, %v576_v4  ;;  %v245_v48 = vstv %s596_s7  ;;  %s623_s15 = sld [smem:[#allocation3 + $0x19]] }
  0x31   :  { %v186_v49 = vadd.f32 %v185_v41, %v182_v43  ;;  %v246_v50 = vmul.f32 %v245_v48, %v578_v5  ;;  %v275_v51 = vstv %s599_s8  ;;  %s627_s16 = sld [smem:[#allocation3 + $0x8]] }
  0x32   :  { %v156_v52 = vcombine.high %v155_v46, %v155_v46  ;;  %v243_v53 = vadd.f32 %v242_v47, %v239_v44  ;;  %v276_v54 = vmul.f32 %v275_v51, %v574_v3  ;;  %v278_v55 = vstv %s602_s10  ;;  %s631_s17 = sld [smem:[#allocation3 + $0x11]] }
  0x33   :  { %159 = vrot.lane.b32.xlu0 %v155_v46, %s541_s18  ;;  %v194_v56 = vrot.slane %v186_v49, %v584_v15  ;;  %v279_v57 = vmul.f32 %v278_v55, %v576_v4  ;;  %v282_v58 = vstv %s608_s11  ;;  %s454_s19 = sld [smem:[#allocation3 + $0x1a]] }
  0x34   :  { %161 = vrot.lane.b32.xlu1 %v156_v52, %s541_s18  ;;  %v247_v59 = vadd.f32 %v246_v50, %v243_v53  ;;  %v283_v60 = vmul.f32 %v282_v58, %v578_v5  ;;  %v314_v61 = vstv %s612_s12  ;;  %s440_s0 = sld [smem:[#allocation3 + $0x4]]  ;;  %v60_v53 = vstv %s770_s1  ;;  %s547_s1 = smov [#allocation8]  }
  0x35   :  { %v195_v62 = vcombine.high %v194_v56, %v194_v56  ;;  %v280_v63 = vadd.f32 %v279_v57, %v276_v54  ;;  %v315_v1 = vmul.f32 %v314_v61, %v574_v3  ;;  %v317_v2 = vstv %s618_s14  ;;  %s441_s20 = sld [smem:[#allocation3 + $0xd]]  ;;  %s419_s28 = sshll.u32 %s547_s1, 4  ;;  %s420_s28 = int_to_ptr.vmem [resolvable:$true] %s419_s28 }
  0x36   :  { %v255_v6 = vrot.slane %v247_v59, %v584_v15  ;;  %v318_v7 = vmul.f32 %v317_v2, %v576_v4  ;;  %v321_v8 = vstv %s623_s15  ;;  %s442_s21 = sld [smem:[#allocation3 + $0x16]]  ;;  %s510_s29 = scalar_lea.vmem %s420_s28, 64 }
  0x37   :  { %198 = vrot.lane.b32.xlu0 %v194_v56, %s542_s22  ;;  %v284_v10 = vadd.f32 %v283_v60, %v280_v63  ;;  %v322_v11 = vmul.f32 %v321_v8, %v578_v5  ;;  %v351_v12 = vstv %s627_s16  ;;  %p511_p10 = scmp.ne.s32.totalorder %s420_s28, %s510_s29  ;;  %p515_p11 = scmp.lt.s32.totalorder %s420_s28, %s420_s28 }
  0x38   :  { %200 = vrot.lane.b32.xlu1 %v195_v62, %s542_s22  ;;  %v256_v13 = vcombine.high %v255_v6, %v255_v6  ;;  %v319_v14 = vadd.f32 %v318_v7, %v315_v1  ;;  %v352_v16 = vmul.f32 %v351_v12, %v574_v3  ;;  %v354_v17 = vstv %s631_s17  ;;  %p516_p12 = scmp.lt.s32.totalorder %s510_s29, %s510_s29 }
  0x39   :  { %v292_v18 = vrot.slane %v284_v10, %v584_v15  ;;  %v355_v19 = vmul.f32 %v354_v17, %v576_v4  ;;  %v358_v20 = vstv %s454_s19 }
  0x3a   :  { %v323_v21 = vadd.f32 %v322_v11, %v319_v14  ;;  %v359_v22 = vmul.f32 %v358_v20, %v578_v5  ;;  %v214_v23 = vstv %s440_s0  ;;  %p517_p13 = por %p516_p12, %p515_p11 }
  0x3b   :  { %85 = vrot.lane.b32.xlu0 %v80_v9, %s540_s13  ;;  %v356_v24 = vadd.f32 %v355_v19, %v352_v16  ;;  %v215_v25 = vmul.f32 %v214_v23, %v574_v3  ;;  %v217_v26 = vstv %s441_s20  ;;  %v293_v27 = vcombine.high %v292_v18, %v292_v18 }
  0x3c   :  { %261 = vrot.lane.b32.xlu1 %v256_v13, %s543_s23  ;;  %v331_v28 = vrot.slane %v323_v21, %v584_v15  ;;  %v218_v29 = vmul.f32 %v217_v26, %v576_v4  ;;  %v221_v30 = vstv %s442_s21  ;;  %p518_p0 = pnand %p517_p13, %p511_p10 }
  0x3d   :  { %v360_v31 = vadd.f32 %v359_v22, %v356_v24  ;;  %v222_v32 = vmul.f32 %v221_v30, %v578_v5  ;;  %v662_v5 = vand.u32 127, %v41_v0 }
  0x3e   :  { %v219_v33 = vadd.f32 %v218_v29, %v215_v25  ;;  %v332_v34 = vcombine.high %v331_v28, %v331_v28 }
  0x3f   :  { %259 = vrot.lane.b32.xlu0 %v255_v6, %s543_s23  ;;  %v368_v35 = vrot.slane %v360_v31, %v584_v15  ;;  %v43_v40 = vadd.s32 128, %v662_v5  ;;  %v46_v43 = vand.u32 15, %v662_v5  ;;  %vm126_vm4 = vcmp.lt.s32.totalorder %v662_v5, 16 }
  0x40   :  { %298 = vrot.lane.b32.xlu1 %v293_v27, %s544_s24  ;;  %v223_v3 = vadd.f32 %v222_v32, %v219_v33  ;;  %vm87_vm5 = vcmp.lt.s32.totalorder %v662_v5, 17  ;;  %vm163_vm10 = vcmp.lt.s32.totalorder %v662_v5, 15  ;;  %vm202_vm12 = vcmp.lt.s32.totalorder %v662_v5, 1 }
  0x41   :  { %v369_v37 = vcombine.high %v368_v35, %v368_v35  ;;  %v45_v44 = vshra.s32 %v43_v40, 4  ;;  %v47_v45 = vand.u32 15, %v43_v40  ;;  %vm667_vm0 = vcmp.ge.s32.totalorder %v46_v43, 1 }
  0x42   :  { %v659_v36 = vrot.slane %v223_v3, %v584_v15  ;;  %v44_v15 = vshra.s32 %v662_v5, 4  ;;  %vm689_vm7 = vcmp.le.s32.totalorder %v46_v43, 14  ;;  %vm263_vm14 = vcmp.lt.s32.totalorder %v662_v5, 127 }
  0x43   :  { %296 = vrot.lane.b32.xlu0 %v292_v18, %s544_s24  ;;  %vm671_vm1 = vcmp.ge.s32.totalorder %v47_v45, 1  ;;  %vm679_vm3 = vcmp.ge.s32.totalorder %v45_v44, 1  ;;  %vm697_vm9 = vcmp.le.s32.totalorder %v47_v45, 14 }
  0x44   :  { %337 = vrot.lane.b32.xlu1 %v332_v34, %s545_s25  ;;  %vm675_vm2 = vcmp.ge.s32.totalorder %v44_v15, 1  ;;  %vm91_vm8 = vmand %vm679_vm3, %vm671_vm1  ;;  %v232_v19 = vcombine.high %v659_v36, %v659_v36  ;;  %vm726_vm15 = vcmp.le.s32.totalorder %v44_v15, 14 }
  0x45   :  { %vm90_vm6 = vmand %vm675_vm2, %vm667_vm0 }
  0x46   :  { %vm166_vm11 = vmand %vm675_vm2, %vm689_vm7 }
  0x47   :  { %335 = vrot.lane.b32.xlu0 %v331_v28, %s545_s25  ;;  %vm167_vm13 = vmand %vm679_vm3, %vm697_vm9 }
  0x48   :  { %374 = vrot.lane.b32.xlu1 %v369_v37, %s546_s26 }
  0x4b   :  { %372 = vrot.lane.b32.xlu0 %v368_v35, %s546_s26 }
  0x9e   :  { %v123_v4 = vpop.permute.xlu1 %122 }
  0xa1   :  { %v84_v38 = vpop.permute.xlu0 %83 }
  0xa2   :  { %v125_v39 = vpop.permute.xlu1 %124 }
  0xa3   :  { %v127_v55 = vsel %vm126_vm4, %v123_v4, %v125_v39  ;;  %v128_v56 = vsel %vm126_vm4, %v125_v39, %v123_v4  ;;  %vm303_vm4 = vmand %vm726_vm15, %vm667_vm0 }
  0xa4   :  { %v133_v6 = vsel %vm675_vm2, %v128_v56, 0.0  ;;  %v134_v7 = vsel %vm679_vm3, %v127_v55, 0.0  ;;  %vm734_vm2 = vcmp.le.s32.totalorder %v45_v44, 14  ;;  %vm300_vm3 = vcmp.lt.s32.totalorder %v662_v5, 113 }
  0xa5   :  { %v160_v41 = vpop.permute.xlu0 %159 }
  0xa6   :  { %v162_v42 = vpop.permute.xlu1 %161 }
  0xa7   :  { %v164_v62 = vsel %vm163_vm10, %v160_v41, %v162_v42  ;;  %v165_v63 = vsel %vm163_vm10, %v162_v42, %v160_v41 }
  0xa8   :  { %v172_v14 = vsel %vm166_vm11, %v165_v63, 0.0  ;;  %v173_v16 = vsel %vm167_vm13, %v164_v62, 0.0 }
  0xa9   :  { %v199_v47 = vpop.permute.xlu0 %198 }
  0xaa   :  { %v201_v49 = vpop.permute.xlu1 %200 }
  0xab   :  { %v203_v9 = vsel %vm202_vm12, %v199_v47, %v201_v49  ;;  %v204_v10 = vsel %vm202_vm12, %v201_v49, %v199_v47 }
  0xac   :  { %v209_v21 = vsel %vm667_vm0, %v204_v10, 0.0  ;;  %v210_v22 = vsel %vm671_vm1, %v203_v9, 0.0  ;;  %vm376_vm0 = vcmp.lt.s32.totalorder %v662_v5, 111 }
  0xad   :  { %v86_v54 = vpop.permute.xlu0 %85 }
  0xae   :  { %v88_v57 = vsel %vm87_vm5, %v84_v38, %v86_v54  ;;  %v89_v58 = vsel %vm87_vm5, %v86_v54, %v84_v38  ;;  %v262_v59 = vpop.permute.xlu1 %261  ;;  %vm339_vm5 = vcmp.lt.s32.totalorder %v662_v5, 112 }
  0xaf   :  { %v96_v60 = vsel %vm90_vm6, %v89_v58, 0.0  ;;  %v97_v61 = vsel %vm91_vm8, %v88_v57, 0.0  ;;  %vm304_vm6 = vmand %vm734_vm2, %vm671_vm1 }
  0xb0   :  { %v98_v1 = vadd.f32 %v96_v60, %v60_v53  ;;  %v99_v2 = vadd.f32 %v97_v61, %v60_v53  ;;  %vm379_vm1 = vmand %vm726_vm15, %vm689_vm7 }
  0xb1   :  { %v260_v8 = vpop.permute.xlu0 %259  ;;  %vm380_vm8 = vmand %vm734_vm2, %vm697_vm9 }
  0xb2   :  { %v135_v11 = vadd.f32 %v133_v6, %v98_v1  ;;  %v136_v12 = vadd.f32 %v134_v7, %v99_v2  ;;  %v299_v13 = vpop.permute.xlu1 %298  ;;  %v264_v27 = vsel %vm263_vm14, %v260_v8, %v262_v59  ;;  %v265_v28 = vsel %vm263_vm14, %v262_v59, %v260_v8 }
  0xb3   :  { %v270_v34 = vsel %vm689_vm7, %v264_v27, 0.0  ;;  %v271_v35 = vsel %vm697_vm9, %v265_v28, 0.0 }
  0xb4   :  { %v174_v17 = vadd.f32 %v172_v14, %v135_v11  ;;  %v175_v18 = vadd.f32 %v173_v16, %v136_v12 }
  0xb5   :  { %v297_v23 = vpop.permute.xlu0 %296 }
  0xb6   :  { %v211_v25 = vadd.f32 %v209_v21, %v174_v17  ;;  %v212_v26 = vadd.f32 %v210_v22, %v175_v18  ;;  %v338_v29 = vpop.permute.xlu1 %337  ;;  %v301_v32 = vsel %vm300_vm3, %v297_v23, %v299_v13  ;;  %v302_v33 = vsel %vm300_vm3, %v299_v13, %v297_v23 }
  0xb7   :  { %v310_v40 = vsel %vm304_vm6, %v302_v33, 0.0 }
  0xb8   :  { %v235_v30 = vadd.f32 %v659_v36, %v211_v25  ;;  %v236_v31 = vadd.f32 %v232_v19, %v212_v26  ;;  %v309_v36 = vsel %vm303_vm4, %v301_v32, 0.0 }
  0xb9   :  { %v336_v3 = vpop.permute.xlu0 %335 }
  0xba   :  { %v272_v37 = vadd.f32 %v270_v34, %v235_v30  ;;  %v273_v4 = vadd.f32 %v271_v35, %v236_v31  ;;  %v340_v38 = vsel %vm339_vm5, %v336_v3, %v338_v29  ;;  %v341_v39 = vsel %vm339_vm5, %v338_v29, %v336_v3  ;;  %v375_v41 = vpop.permute.xlu1 %374 }
  0xbb   :  { %v346_v43 = vsel %vm726_vm15, %v340_v38, 0.0  ;;  %v347_v44 = vsel %vm734_vm2, %v341_v39, 0.0 }
  0xbc   :  { %v311_v15 = vadd.f32 %v309_v36, %v272_v37  ;;  %v312_v42 = vadd.f32 %v310_v40, %v273_v4 }
  0xbd   :  { %v373_v45 = vpop.permute.xlu0 %372 }
  0xbe   :  { %v348_v5 = vadd.f32 %v346_v43, %v311_v15  ;;  %v349_v46 = vadd.f32 %v347_v44, %v312_v42  ;;  %v377_v47 = vsel %vm376_vm0, %v373_v45, %v375_v41  ;;  %v378_v0 = vsel %vm376_vm0, %v375_v41, %v373_v45 }
  0xbf   :  { %v385_v48 = vsel %vm379_vm1, %v377_v47, 0.0  ;;  %v386_v49 = vsel %vm380_vm8, %v378_v0, 0.0 }
  0xc0   :  { %v387_v50 = vadd.f32 %v385_v48, %v348_v5  ;;  %v388_v51 = vadd.f32 %v386_v49, %v349_v46 }
  0xc2   :  { %v455_v53 = vmul.f32 -1.442695, %v387_v50  ;;  %v456_v52 = vmul.f32 -1.442695, %v388_v51 }
  0xc4   :  { %470 = vpow2.f32 %v455_v53 }
  0xc5   :  { %472 = vpow2.f32 %v456_v52 }
  0xd1   :  { %v471_v54 = vpop.eup %470 }
  0xd2   :  { %v473_v55 = vpop.eup %472  ;;  %v395_v56 = vadd.f32 1.0, %v471_v54 }
  0xd3   :  { %v396_v57 = vadd.f32 1.0, %v473_v55 }
  0xd4   :  { %474 = vrcp.f32 %v395_v56 }
  0xd5   :  { %476 = vrcp.f32 %v396_v57 }
  0xe1   :  { %v475_v58 = vpop.eup %474 }
  0xe2   :  { %v477_v59 = vpop.eup %476 }
  0xe3   :  { %v403_v60 = vcombine.low %v475_v58, %v477_v59 }
  0xe5   :  { %457 = vst.sshfl [vmem:[#allocation8] sm:$0x33 pattern:$0x76325410] %v403_v60 }
  0xe6   :  { %521 = shalt.err (!%p518_p0)
}
  0xe7   :  { %422 = dma.vmem_to_hbm [thread:$0]  %s420_s28, 64, %s772_s3, [#allocation5]  }
  0xe8   :  { %534 = dma.done.wait [#allocation5], 64  }
  0xe9   :  { %535 = vsyncadd [#allocation5], 4294967232 }
  0xea   :  { %426 = vsyncpa [#allocation4], 1 }
  0xeb   :  { %427 = vsyncpa [#allocation5], 1 }
  0xec   :  { %428 = vsyncpa [#allocation6], 1 }

</bundles_post_ra>
